<compile_context>
chip_gen: v7x
topology: tpu7x:2x2x1
jax: 0.10.0
libtpu: 0.0.40
codegen_flags: <defaults>
</compile_context>

<pallas_src>
import functools
import math

import jax
import jax.numpy as jnp
from jax import lax
from jax.experimental import pallas as pl
from jax.experimental.pallas import tpu as pltpu


def _mha_kernel(mask_ref, q_ref, k_ref, v_ref,
                wqkv_ref, bqkv_ref, wdh_ref, bd_ref,
                out_ref, attn_ref,
                *, num_heads, depth, compute_dtype):
    cast = lambda x: x.astype(compute_dtype)

    x_q = q_ref[0]          # (S, D)
    x_k = k_ref[0]          # (S, D)
    x_v = v_ref[0]          # (S, D)

    # Hoisted: one (S, S) multiply per batch step instead of one per head.
    neg_mask = mask_ref[0, 0] * (-1e9)                     # (S, S) f32
    scale = 1.0 / math.sqrt(float(depth))

    # Q/K/V projections.  Weights arrive stacked as (3, D, D) -> 2 constant
    # operands instead of 6; biases are (3, 1, D).
    qp = jnp.dot(cast(x_q), wqkv_ref[0],
                 preferred_element_type=jnp.float32) + bqkv_ref[0]
    kp = jnp.dot(cast(x_k), wqkv_ref[1],
                 preferred_element_type=jnp.float32) + bqkv_ref[1]
    vp = jnp.dot(cast(x_v), wqkv_ref[2],
                 preferred_element_type=jnp.float32) + bqkv_ref[2]

    # Head split (S, D) -> (H, S, depth): static lane slices + leading-axis
    # stack (same relayout cost as reshape+transpose, robust to lower).
    def split_heads(x):
        return jnp.stack(
            [x[:, h * depth:(h + 1) * depth] for h in range(num_heads)],
            axis=0)

    qh = split_heads(qp)    # (H, S, d)
    kh = split_heads(kp)    # (H, S, d)
    vh = split_heads(vp)    # (H, S, d)

    # Head-batched QK^T: contract last dims directly -> no explicit kh.T.
    logits = lax.dot_general(
        cast(qh), cast(kh), (((2,), (2,)), ((0,), (0,))),
        preferred_element_type=jnp.float32)                # (H, S, S)
    logits = logits * scale + neg_mask[None, :, :]

    # One shared, numerically-stable softmax across all heads.
    m = jnp.max(logits, axis=-1, keepdims=True)
    e = jnp.exp(logits - m)
    denom = jnp.sum(e, axis=-1, keepdims=True)
    aw = e * pl.reciprocal(denom, approx=False)            # (H, S, S)
    attn_ref[0] = aw

    # Head-batched attention * V.
    ctx = lax.dot_general(
        cast(aw), cast(vh), (((2,), (1,)), ((0,), (0,))),
        preferred_element_type=jnp.float32)                # (H, S, d)

    # Final dense without concatenating heads: batched (H,S,d)x(H,d,D) matmul,
    # then a cheap reduction over the leading head axis (pure vector adds).
    partial = lax.dot_general(
        cast(ctx), wdh_ref[...], (((2,), (1,)), ((0,), (0,))),
        preferred_element_type=jnp.float32)                # (H, S, D)
    out_ref[0] = jnp.sum(partial, axis=0) + bd_ref[...]


def multi_head_attention(v, k, q, mask, params, *, num_heads,
                         compute_dtype=jnp.float32):
    """Pallas wrapper reproducing MultiHeadAttention.forward semantics."""
    B, S, D = q.shape
    assert D % num_heads == 0
    depth = D // num_heads

    wq, bq, wk, bk, wv, bv, wd, bd = params

    # Normalize mask (None or broadcastable, e.g. [B,1,1,S]) to [B,1,S,S].
    if mask is None:
        mask = jnp.zeros((B, 1, S, S), jnp.float32)
    else:
        mask = jnp.broadcast_to(mask, (B, 1, S, S)).astype(jnp.float32)

    # Host-side (one-time) weight repacking.
    w_qkv = jnp.stack([wq, wk, wv]).astype(compute_dtype)          # (3, D, D)
    b_qkv = jnp.stack([bq, bk, bv]).astype(jnp.float32)            # (3, 1, D)
    wd_h = wd.reshape(num_heads, depth, D).astype(compute_dtype)   # (H, d, D)

    kernel = functools.partial(_mha_kernel, num_heads=num_heads, depth=depth,
                               compute_dtype=compute_dtype)

    const = lambda shape: pl.BlockSpec(shape, lambda b, _s=len(shape): (0,) * _s)
    per_batch_3d = pl.BlockSpec((1, S, D), lambda b: (b, 0, 0))

    out, attn = pl.pallas_call(
        kernel,
        out_shape=(
            jax.ShapeDtypeStruct((B, S, D), jnp.float32),
            jax.ShapeDtypeStruct((B, num_heads, S, S), jnp.float32),
        ),
        grid_spec=pltpu.PrefetchScalarGridSpec(
            num_scalar_prefetch=0,
            grid=(B,),
            in_specs=[
                pl.BlockSpec((1, 1, S, S), lambda b: (b, 0, 0, 0)),  # mask
                per_batch_3d,                                        # q
                per_batch_3d,                                        # k
                per_batch_3d,                                        # v
                const((3, D, D)),                                    # w_qkv
                const((3, 1, D)),                                    # b_qkv
                const((num_heads, depth, D)),                        # wd per-head
                const((1, D)),                                       # bd
            ],
            out_specs=[
                pl.BlockSpec((1, S, D), lambda b: (b, 0, 0)),
                pl.BlockSpec((1, num_heads, S, S), lambda b: (b, 0, 0, 0)),
            ],
        ),
        compiler_params=pltpu.CompilerParams(
            dimension_semantics=("parallel",)),
    )(mask, q, k, v, w_qkv, b_qkv, wd_h, bd)
    return out, attn


def _reference(v, k, q, mask, params, num_heads):
    """Plain-JAX reference matching the PyTorch module exactly."""
    wq, bq, wk, bk, wv, bv, wd, bd = params
    B, S, D = q.shape
    depth = D // num_heads

    def split_heads(x):
        return x.reshape(B, S, num_heads, depth).transpose(0, 2, 1, 3)

    qp = split_heads(q @ wq + bq[0])
    kp = split_heads(k @ wk + bk[0])
    vp = split_heads(v @ wv + bv[0])
    logits = jnp.einsum("bhqd,bhkd->bhqk", qp, kp) / jnp.sqrt(jnp.float32(depth))
    logits = logits + mask * (-1e9)
    aw = jax.nn.softmax(logits, axis=-1)
    out = jnp.einsum("bhqk,bhkd->bhqd", aw, vp)
    out = out.transpose(0, 2, 1, 3).reshape(B, S, D)
    out = out @ wd + bd[0]
    return out, aw


if __name__ == "__main__":
    B, S, D, H = 2, 8, 32, 4

    key = jax.random.PRNGKey(0)
    keys = jax.random.split(key, 12)

    # Deterministic parameter init (Linear weights stored as (in, out) = W^T).
    bound = 1.0 / math.sqrt(D)

    def w_init(kk):
        return jax.random.uniform(kk, (D, D), jnp.float32, -bound, bound)

    def b_init(kk):
        return jax.random.uniform(kk, (1, D), jnp.float32, -bound, bound)

    params = (
        w_init(keys[0]), b_init(keys[1]),   # wq, bq
        w_init(keys[2]), b_init(keys[3]),   # wk, bk
        w_init(keys[4]), b_init(keys[5]),   # wv, bv
        w_init(keys[6]), b_init(keys[7]),   # dense w, b
    )

    q = jax.random.normal(keys[8], (B, S, D), jnp.float32)
    k = jax.random.normal(keys[9], (B, S, D), jnp.float32)
    v = jax.random.normal(keys[10], (B, S, D), jnp.float32)
    # causal-style additive mask: 1 where attention is blocked, 0 elsewhere
    causal = 1.0 - jnp.tril(jnp.ones((S, S), jnp.float32))
    mask = jnp.broadcast_to(causal, (B, 1, S, S))

    out, attn = multi_head_attention(v, k, q, mask, params, num_heads=H)
    out = jax.block_until_ready(out)
    attn = jax.block_until_ready(attn)

    ref_out, ref_attn = _reference(v, k, q, mask, params, H)
    assert jnp.allclose(out, ref_out, atol=1e-5, rtol=1e-5)
    assert jnp.allclose(attn, ref_attn, atol=1e-5, rtol=1e-5)

    print("KERNEL_OK")
</pallas_src>

<mosaic_0001>
module attributes {stable_mosaic.version = 11 : i64} {
  func.func @_mha_kernel(%arg0: i32, %arg1: memref<1x1x8x8xf32, #tpu.memory_space<vmem>>, %arg2: memref<1x8x32xf32, #tpu.memory_space<vmem>>, %arg3: memref<1x8x32xf32, #tpu.memory_space<vmem>>, %arg4: memref<1x8x32xf32, #tpu.memory_space<vmem>>, %arg5: memref<3x32x32xf32, #tpu.memory_space<vmem>>, %arg6: memref<3x1x32xf32, #tpu.memory_space<vmem>>, %arg7: memref<4x8x32xf32, #tpu.memory_space<vmem>>, %arg8: memref<1x32xf32, #tpu.memory_space<vmem>>, %arg9: memref<1x8x32xf32, #tpu.memory_space<vmem>>, %arg10: memref<1x4x8x8xf32, #tpu.memory_space<vmem>>) attributes {dimension_semantics = [#tpu.dimension_semantics<parallel>], iteration_bounds = array<i64: 2>, scalar_prefetch = 0 : i64, scratch_operands = 0 : i64, tpu.core_type = #tpu.core_type<tc>, window_params = [{transform_indices = @transform_0, window_bounds = array<i64: 1, 1, 8, 8>}, {transform_indices = @transform_1, window_bounds = array<i64: 1, 8, 32>}, {transform_indices = @transform_2, window_bounds = array<i64: 1, 8, 32>}, {transform_indices = @transform_3, window_bounds = array<i64: 1, 8, 32>}, {pipeline_mode = #tpu.pipeline_mode<synchronous>, transform_indices = @transform_4, window_bounds = array<i64: 3, 32, 32>}, {pipeline_mode = #tpu.pipeline_mode<synchronous>, transform_indices = @transform_5, window_bounds = array<i64: 3, 1, 32>}, {pipeline_mode = #tpu.pipeline_mode<synchronous>, transform_indices = @transform_6, window_bounds = array<i64: 4, 8, 32>}, {pipeline_mode = #tpu.pipeline_mode<synchronous>, transform_indices = @transform_7, window_bounds = array<i64: 1, 32>}, {transform_indices = @transform_8, window_bounds = array<i64: 1, 8, 32>}, {transform_indices = @transform_9, window_bounds = array<i64: 1, 4, 8, 8>}]} {
    %c0 = arith.constant 0 : index
    %c0_0 = arith.constant 0 : index
    %c0_1 = arith.constant 0 : index
    %0 = vector.load %arg2[%c0, %c0_0, %c0_1] : memref<1x8x32xf32, #tpu.memory_space<vmem>>, vector<1x8x32xf32>
    %1 = vector.shape_cast %0 : vector<1x8x32xf32> to vector<8x32xf32>
    %c0_2 = arith.constant 0 : index
    %c0_3 = arith.constant 0 : index
    %c0_4 = arith.constant 0 : index
    %2 = vector.load %arg3[%c0_2, %c0_3, %c0_4] : memref<1x8x32xf32, #tpu.memory_space<vmem>>, vector<1x8x32xf32>
    %3 = vector.shape_cast %2 : vector<1x8x32xf32> to vector<8x32xf32>
    %c0_5 = arith.constant 0 : index
    %c0_6 = arith.constant 0 : index
    %c0_7 = arith.constant 0 : index
    %4 = vector.load %arg4[%c0_5, %c0_6, %c0_7] : memref<1x8x32xf32, #tpu.memory_space<vmem>>, vector<1x8x32xf32>
    %5 = vector.shape_cast %4 : vector<1x8x32xf32> to vector<8x32xf32>
    %c0_8 = arith.constant 0 : index
    %c0_9 = arith.constant 0 : index
    %c0_10 = arith.constant 0 : index
    %c0_11 = arith.constant 0 : index
    %6 = vector.load %arg1[%c0_8, %c0_9, %c0_10, %c0_11] : memref<1x1x8x8xf32, #tpu.memory_space<vmem>>, vector<1x1x8x8xf32>
    %7 = vector.shape_cast %6 : vector<1x1x8x8xf32> to vector<8x8xf32>
    %cst = arith.constant -1.000000e+09 : f32
    %8 = vector.broadcast %cst : f32 to vector<8x8xf32>
    %9 = arith.mulf %7, %8 : vector<8x8xf32>
    %c0_12 = arith.constant 0 : index
    %c0_13 = arith.constant 0 : index
    %c0_14 = arith.constant 0 : index
    %10 = vector.load %arg5[%c0_12, %c0_13, %c0_14] : memref<3x32x32xf32, #tpu.memory_space<vmem>>, vector<1x32x32xf32>
    %11 = vector.shape_cast %10 : vector<1x32x32xf32> to vector<32x32xf32>
    %cst_15 = arith.constant dense<0.000000e+00> : vector<8x32xf32>
    %12 = tpu.matmul %1, %11, %cst_15 {dimension_numbers = #tpu.dot_dimension_numbers<[1], [0], [0], [1], [0, 0, 1, 1], [], []>} : vector<8x32xf32>, vector<32x32xf32>, vector<8x32xf32> -> vector<8x32xf32>
    %c0_16 = arith.constant 0 : index
    %c0_17 = arith.constant 0 : index
    %c0_18 = arith.constant 0 : index
    %13 = vector.load %arg6[%c0_16, %c0_17, %c0_18] : memref<3x1x32xf32, #tpu.memory_space<vmem>>, vector<1x1x32xf32>
    %14 = vector.shape_cast %13 : vector<1x1x32xf32> to vector<1x32xf32>
    %15 = vector.broadcast %14 : vector<1x32xf32> to vector<8x32xf32>
    %16 = arith.addf %12, %15 : vector<8x32xf32>
    %c1 = arith.constant 1 : index
    %c0_19 = arith.constant 0 : index
    %c0_20 = arith.constant 0 : index
    %17 = vector.load %arg5[%c1, %c0_19, %c0_20] : memref<3x32x32xf32, #tpu.memory_space<vmem>>, vector<1x32x32xf32>
    %18 = vector.shape_cast %17 : vector<1x32x32xf32> to vector<32x32xf32>
    %cst_21 = arith.constant dense<0.000000e+00> : vector<8x32xf32>
    %19 = tpu.matmul %3, %18, %cst_21 {dimension_numbers = #tpu.dot_dimension_numbers<[1], [0], [0], [1], [0, 0, 1, 1], [], []>} : vector<8x32xf32>, vector<32x32xf32>, vector<8x32xf32> -> vector<8x32xf32>
    %c1_22 = arith.constant 1 : index
    %c0_23 = arith.constant 0 : index
    %c0_24 = arith.constant 0 : index
    %20 = vector.load %arg6[%c1_22, %c0_23, %c0_24] : memref<3x1x32xf32, #tpu.memory_space<vmem>>, vector<1x1x32xf32>
    %21 = vector.shape_cast %20 : vector<1x1x32xf32> to vector<1x32xf32>
    %22 = vector.broadcast %21 : vector<1x32xf32> to vector<8x32xf32>
    %23 = arith.addf %19, %22 : vector<8x32xf32>
    %c2 = arith.constant 2 : index
    %c0_25 = arith.constant 0 : index
    %c0_26 = arith.constant 0 : index
    %24 = vector.load %arg5[%c2, %c0_25, %c0_26] : memref<3x32x32xf32, #tpu.memory_space<vmem>>, vector<1x32x32xf32>
    %25 = vector.shape_cast %24 : vector<1x32x32xf32> to vector<32x32xf32>
    %cst_27 = arith.constant dense<0.000000e+00> : vector<8x32xf32>
    %26 = tpu.matmul %5, %25, %cst_27 {dimension_numbers = #tpu.dot_dimension_numbers<[1], [0], [0], [1], [0, 0, 1, 1], [], []>} : vector<8x32xf32>, vector<32x32xf32>, vector<8x32xf32> -> vector<8x32xf32>
    %c2_28 = arith.constant 2 : index
    %c0_29 = arith.constant 0 : index
    %c0_30 = arith.constant 0 : index
    %27 = vector.load %arg6[%c2_28, %c0_29, %c0_30] : memref<3x1x32xf32, #tpu.memory_space<vmem>>, vector<1x1x32xf32>
    %28 = vector.shape_cast %27 : vector<1x1x32xf32> to vector<1x32xf32>
    %29 = vector.broadcast %28 : vector<1x32xf32> to vector<8x32xf32>
    %30 = arith.addf %26, %29 : vector<8x32xf32>
    %31 = vector.extract_strided_slice %16 {offsets = [0, 0], sizes = [8, 8], strides = [1, 1]} : vector<8x32xf32> to vector<8x8xf32>
    %32 = vector.extract_strided_slice %16 {offsets = [0, 8], sizes = [8, 8], strides = [1, 1]} : vector<8x32xf32> to vector<8x8xf32>
    %33 = vector.extract_strided_slice %16 {offsets = [0, 16], sizes = [8, 8], strides = [1, 1]} : vector<8x32xf32> to vector<8x8xf32>
    %34 = vector.extract_strided_slice %16 {offsets = [0, 24], sizes = [8, 8], strides = [1, 1]} : vector<8x32xf32> to vector<8x8xf32>
    %35 = vector.shape_cast %31 : vector<8x8xf32> to vector<1x8x8xf32>
    %36 = vector.shape_cast %32 : vector<8x8xf32> to vector<1x8x8xf32>
    %37 = vector.shape_cast %33 : vector<8x8xf32> to vector<1x8x8xf32>
    %38 = vector.shape_cast %34 : vector<8x8xf32> to vector<1x8x8xf32>
    %39 = tpu.concatenate %35, %36, %37, %38 in 0 : vector<1x8x8xf32>, vector<1x8x8xf32>, vector<1x8x8xf32>, vector<1x8x8xf32> -> vector<4x8x8xf32>
    %40 = vector.extract_strided_slice %23 {offsets = [0, 0], sizes = [8, 8], strides = [1, 1]} : vector<8x32xf32> to vector<8x8xf32>
    %41 = vector.extract_strided_slice %23 {offsets = [0, 8], sizes = [8, 8], strides = [1, 1]} : vector<8x32xf32> to vector<8x8xf32>
    %42 = vector.extract_strided_slice %23 {offsets = [0, 16], sizes = [8, 8], strides = [1, 1]} : vector<8x32xf32> to vector<8x8xf32>
    %43 = vector.extract_strided_slice %23 {offsets = [0, 24], sizes = [8, 8], strides = [1, 1]} : vector<8x32xf32> to vector<8x8xf32>
    %44 = vector.shape_cast %40 : vector<8x8xf32> to vector<1x8x8xf32>
    %45 = vector.shape_cast %41 : vector<8x8xf32> to vector<1x8x8xf32>
    %46 = vector.shape_cast %42 : vector<8x8xf32> to vector<1x8x8xf32>
    %47 = vector.shape_cast %43 : vector<8x8xf32> to vector<1x8x8xf32>
    %48 = tpu.concatenate %44, %45, %46, %47 in 0 : vector<1x8x8xf32>, vector<1x8x8xf32>, vector<1x8x8xf32>, vector<1x8x8xf32> -> vector<4x8x8xf32>
    %49 = vector.extract_strided_slice %30 {offsets = [0, 0], sizes = [8, 8], strides = [1, 1]} : vector<8x32xf32> to vector<8x8xf32>
    %50 = vector.extract_strided_slice %30 {offsets = [0, 8], sizes = [8, 8], strides = [1, 1]} : vector<8x32xf32> to vector<8x8xf32>
    %51 = vector.extract_strided_slice %30 {offsets = [0, 16], sizes = [8, 8], strides = [1, 1]} : vector<8x32xf32> to vector<8x8xf32>
    %52 = vector.extract_strided_slice %30 {offsets = [0, 24], sizes = [8, 8], strides = [1, 1]} : vector<8x32xf32> to vector<8x8xf32>
    %53 = vector.shape_cast %49 : vector<8x8xf32> to vector<1x8x8xf32>
    %54 = vector.shape_cast %50 : vector<8x8xf32> to vector<1x8x8xf32>
    %55 = vector.shape_cast %51 : vector<8x8xf32> to vector<1x8x8xf32>
    %56 = vector.shape_cast %52 : vector<8x8xf32> to vector<1x8x8xf32>
    %57 = tpu.concatenate %53, %54, %55, %56 in 0 : vector<1x8x8xf32>, vector<1x8x8xf32>, vector<1x8x8xf32>, vector<1x8x8xf32> -> vector<4x8x8xf32>
    %cst_31 = arith.constant dense<0.000000e+00> : vector<4x8x8xf32>
    %58 = tpu.matmul %39, %48, %cst_31 {dimension_numbers = #tpu.dot_dimension_numbers<[2], [2], [1], [1], [0, 0, 0, 1, 1, 1], [0], [0]>} : vector<4x8x8xf32>, vector<4x8x8xf32>, vector<4x8x8xf32> -> vector<4x8x8xf32>
    %cst_32 = arith.constant 0.353553385 : f32
    %59 = vector.broadcast %cst_32 : f32 to vector<4x8x8xf32>
    %60 = arith.mulf %58, %59 : vector<4x8x8xf32>
    %61 = vector.shape_cast %9 : vector<8x8xf32> to vector<1x8x8xf32>
    %62 = vector.broadcast %61 : vector<1x8x8xf32> to vector<4x8x8xf32>
    %63 = arith.addf %60, %62 : vector<4x8x8xf32>
    %cst_33 = arith.constant dense<0xFF800000> : vector<4x8xf32>
    %64 = vector.multi_reduction <maximumf>, %63, %cst_33 [2] : vector<4x8x8xf32> to vector<4x8xf32>
    %65 = vector.shape_cast %64 : vector<4x8xf32> to vector<4x8x1xf32>
    %66 = vector.broadcast %65 : vector<4x8x1xf32> to vector<4x8x8xf32>
    %67 = arith.subf %63, %66 : vector<4x8x8xf32>
    %68 = math.exp %67 : vector<4x8x8xf32>
    %cst_34 = arith.constant dense<0.000000e+00> : vector<4x8xf32>
    %69 = vector.multi_reduction <add>, %68, %cst_34 [2] : vector<4x8x8xf32> to vector<4x8xf32>
    %70 = vector.shape_cast %69 : vector<4x8xf32> to vector<4x8x1xf32>
    %71 = tpu.reciprocal %70 : vector<4x8x1xf32> -> vector<4x8x1xf32>
    %72 = vector.broadcast %71 : vector<4x8x1xf32> to vector<4x8x8xf32>
    %73 = arith.mulf %68, %72 : vector<4x8x8xf32>
    %c0_35 = arith.constant 0 : index
    %c0_36 = arith.constant 0 : index
    %c0_37 = arith.constant 0 : index
    %c0_38 = arith.constant 0 : index
    %74 = vector.load %arg10[%c0_35, %c0_36, %c0_37, %c0_38] : memref<1x4x8x8xf32, #tpu.memory_space<vmem>>, vector<1x4x8x8xf32>
    %75 = vector.shape_cast %74 : vector<1x4x8x8xf32> to vector<4x8x8xf32>
    %76 = vector.shape_cast %73 : vector<4x8x8xf32> to vector<1x4x8x8xf32>
    tpu.vector_store %arg10[%c0_35, %c0_36, %c0_37, %c0_38], %76 {strides = array<i32>} : memref<1x4x8x8xf32, #tpu.memory_space<vmem>>, vector<1x4x8x8xf32>,
    %cst_39 = arith.constant dense<0.000000e+00> : vector<4x8x8xf32>
    %77 = tpu.matmul %73, %57, %cst_39 {dimension_numbers = #tpu.dot_dimension_numbers<[2], [1], [1], [2], [0, 0, 0, 1, 1, 2], [0], [0]>} : vector<4x8x8xf32>, vector<4x8x8xf32>, vector<4x8x8xf32> -> vector<4x8x8xf32>
    %c0_40 = arith.constant 0 : index
    %c0_41 = arith.constant 0 : index
    %c0_42 = arith.constant 0 : index
    %78 = vector.load %arg7[%c0_40, %c0_41, %c0_42] : memref<4x8x32xf32, #tpu.memory_space<vmem>>, vector<4x8x32xf32>
    %cst_43 = arith.constant dense<0.000000e+00> : vector<4x8x32xf32>
    %79 = tpu.matmul %77, %78, %cst_43 {dimension_numbers = #tpu.dot_dimension_numbers<[2], [1], [1], [2], [0, 0, 0, 1, 1, 2], [0], [0]>} : vector<4x8x8xf32>, vector<4x8x32xf32>, vector<4x8x32xf32> -> vector<4x8x32xf32>
    %cst_44 = arith.constant dense<0.000000e+00> : vector<8x32xf32>
    %80 = vector.multi_reduction <add>, %79, %cst_44 [0] : vector<4x8x32xf32> to vector<8x32xf32>
    %c0_45 = arith.constant 0 : index
    %c0_46 = arith.constant 0 : index
    %81 = vector.load %arg8[%c0_45, %c0_46] : memref<1x32xf32, #tpu.memory_space<vmem>>, vector<1x32xf32>
    %82 = vector.broadcast %81 : vector<1x32xf32> to vector<8x32xf32>
    %83 = arith.addf %80, %82 : vector<8x32xf32>
    %c0_47 = arith.constant 0 : index
    %c0_48 = arith.constant 0 : index
    %c0_49 = arith.constant 0 : index
    %84 = vector.load %arg9[%c0_47, %c0_48, %c0_49] : memref<1x8x32xf32, #tpu.memory_space<vmem>>, vector<1x8x32xf32>
    %85 = vector.shape_cast %84 : vector<1x8x32xf32> to vector<8x32xf32>
    %86 = vector.shape_cast %83 : vector<8x32xf32> to vector<1x8x32xf32>
    tpu.vector_store %arg9[%c0_47, %c0_48, %c0_49], %86 {strides = array<i32>} : memref<1x8x32xf32, #tpu.memory_space<vmem>>, vector<1x8x32xf32>,
    return
  }
  func.func @transform_0(%arg0: i32) -> (i32, i32, i32, i32) {
    %c0_i32 = arith.constant 0 : i32
    %c0_i32_0 = arith.constant 0 : i32
    %c0_i32_1 = arith.constant 0 : i32
    %c0_i32_2 = arith.constant 0 : i32
    return %arg0, %c0_i32, %c0_i32_0, %c0_i32_1 : i32, i32, i32, i32
  }
  func.func @transform_1(%arg0: i32) -> (i32, i32, i32) {
    %c0_i32 = arith.constant 0 : i32
    %c0_i32_0 = arith.constant 0 : i32
    %c0_i32_1 = arith.constant 0 : i32
    return %arg0, %c0_i32, %c0_i32_0 : i32, i32, i32
  }
  func.func @transform_2(%arg0: i32) -> (i32, i32, i32) {
    %c0_i32 = arith.constant 0 : i32
    %c0_i32_0 = arith.constant 0 : i32
    %c0_i32_1 = arith.constant 0 : i32
    return %arg0, %c0_i32, %c0_i32_0 : i32, i32, i32
  }
  func.func @transform_3(%arg0: i32) -> (i32, i32, i32) {
    %c0_i32 = arith.constant 0 : i32
    %c0_i32_0 = arith.constant 0 : i32
    %c0_i32_1 = arith.constant 0 : i32
    return %arg0, %c0_i32, %c0_i32_0 : i32, i32, i32
  }
  func.func @transform_4(%arg0: i32) -> (i32, i32, i32) {
    %c0_i32 = arith.constant 0 : i32
    %c0_i32_0 = arith.constant 0 : i32
    %c0_i32_1 = arith.constant 0 : i32
    %c0_i32_2 = arith.constant 0 : i32
    return %c0_i32, %c0_i32_0, %c0_i32_1 : i32, i32, i32
  }
  func.func @transform_5(%arg0: i32) -> (i32, i32, i32) {
    %c0_i32 = arith.constant 0 : i32
    %c0_i32_0 = arith.constant 0 : i32
    %c0_i32_1 = arith.constant 0 : i32
    %c0_i32_2 = arith.constant 0 : i32
    return %c0_i32, %c0_i32_0, %c0_i32_1 : i32, i32, i32
  }
  func.func @transform_6(%arg0: i32) -> (i32, i32, i32) {
    %c0_i32 = arith.constant 0 : i32
    %c0_i32_0 = arith.constant 0 : i32
    %c0_i32_1 = arith.constant 0 : i32
    %c0_i32_2 = arith.constant 0 : i32
    return %c0_i32, %c0_i32_0, %c0_i32_1 : i32, i32, i32
  }
  func.func @transform_7(%arg0: i32) -> (i32, i32) {
    %c0_i32 = arith.constant 0 : i32
    %c0_i32_0 = arith.constant 0 : i32
    %c0_i32_1 = arith.constant 0 : i32
    return %c0_i32, %c0_i32_0 : i32, i32
  }
  func.func @transform_8(%arg0: i32) -> (i32, i32, i32) {
    %c0_i32 = arith.constant 0 : i32
    %c0_i32_0 = arith.constant 0 : i32
    %c0_i32_1 = arith.constant 0 : i32
    return %arg0, %c0_i32, %c0_i32_0 : i32, i32, i32
  }
  func.func @transform_9(%arg0: i32) -> (i32, i32, i32, i32) {
    %c0_i32 = arith.constant 0 : i32
    %c0_i32_0 = arith.constant 0 : i32
    %c0_i32_1 = arith.constant 0 : i32
    %c0_i32_2 = arith.constant 0 : i32
    return %arg0, %c0_i32, %c0_i32_0, %c0_i32_1 : i32, i32, i32, i32
  }
}

</mosaic_0001>

<bundles_post_ra>
// kernel: tpu_custom_call.1
= control target key start
LH: loop header
LB: loop body
LE: loop exit
PB: predicated region body
PF: predicated region fallthrough
CT: control target
= control target key end

     0   :  { %s3133_s0 = inlined_call_operand.hbm [shape: f32[2,1,8,8], index: 0, kind: input, shape index: {}]   ;;  %s3134_s1 = inlined_call_operand.hbm [shape: f32[2,8,32], index: 1, kind: input, shape index: {}]   ;;  %s3135_s2 = inlined_call_operand.hbm [shape: f32[2,8,32], index: 2, kind: input, shape index: {}]   ;;  %s3136_s3 = inlined_call_operand.hbm [shape: f32[2,8,32], index: 3, kind: input, shape index: {}]   ;;  %s3137_s4 = inlined_call_operand.hbm [shape: f32[3,32,32], index: 4, kind: input, shape index: {}]   ;;  %s3138_s5 = inlined_call_operand.vmem [shape: f32[3,1,32], index: 5, kind: input, shape index: {}]   ;;  %s3139_s6 = inlined_call_operand.hbm [shape: f32[4,8,32], index: 6, kind: input, shape index: {}]   ;;  %s3140_s7 = inlined_call_operand.vmem [shape: f32[1,32], index: 7, kind: input, shape index: {}]   ;;  %s3141_s8 = inlined_call_operand.hbm [shape: f32[2,8,32], index: 8, kind: output, shape index: {0}]   ;;  %s3142_s9 = inlined_call_operand.hbm [shape: f32[2,4,8,8], index: 9, kind: output, shape index: {1}]  }
   0x1   :  { %3164 = sst [smem:[#allocation27_spill]] %s3133_s0 }
   0x2   :  { %3165 = sst [smem:[#allocation28_spill]] %s3134_s1 }
   0x3   :  { %3166 = sst [smem:[#allocation29_spill]] %s3137_s4 }
   0x4   :  { %3167 = sst [smem:[#allocation30_spill]] %s3140_s7 }
   0x5   :  { %3168 = sst [smem:[#allocation31_spill]] %s3141_s8 }
   0x6   :  { %3169 = sst [smem:[#allocation32_spill]] %s3142_s9 }
   0x7   :  { %15 = vsyncpa [#allocation3], 0 }
   0x8   :  { %17 = vsyncpa [#allocation3 + $0x1], 0 }
   0x9   :  { %18 = vsyncpa [#allocation6], 0 }
   0xa   :  { %20 = vsyncpa [#allocation6 + $0x1], 0 }
   0xb   :  { %21 = vsyncpa [#allocation9], 0 }
   0xc   :  { %23 = vsyncpa [#allocation9 + $0x1], 0 }
   0xd   :  { %24 = vsyncpa [#allocation12], 0 }
   0xe   :  { %25 = vsyncpa [#allocation4], 0 }
   0xf   :  { %27 = vsyncpa [#allocation4 + $0x1], 0 }
  0x10   :  { %28 = vsyncpa [#allocation15], 0 }
  0x11   :  { %30 = vsyncpa [#allocation15 + $0x1], 0  ;;  %s2639_s30 = smov 0   ;;  %s2641_s10 = smov 0  }
  0x12   :  { %s2643_s11 = smov 0   ;;  %s2645_s12 = smov 0  }
  0x13 LB: > { %3170 = sst [smem:[#allocation23_spill]] %s2557_s30  ;;  %s2660_s13 = sadd.s32 4294967295, %s2569_s12   ;;  %s2569_s12 = sphi %s2645_s12, %s3210_s12   ;;  %s2565_s11 = sphi %s2643_s11, %s3214_s11   ;;  %s2561_s10 = sphi %s2641_s10, %s3213_s10   ;;  %s2557_s30 = sphi %s2639_s30, %s3212_s30  }
  0x14   : > { %s1961_s14 = sadd.s32 4294967294, %s2569_s12   ;;  %p56_p0 = scmp.ne.s32.totalorder %s2561_s10, %s2557_s30 }
  0x15   : > { %p3143_p1 = scmp.eq.s32.totalorder %s2660_s13, 0  ;;  %p248_p3 = scmp.eq.s32.totalorder %s1961_s14, 1 }
  0x16   : > { %p1962_p5 = scmp.ge.s32.totalorder %s2569_s12, 1  ;;  %p281_p7 = scmp.lt.s32.totalorder %s2569_s12, 3 }
  0x17   : > { %p2669_p4 = por %p3143_p1, %p56_p0  ;;  %p2674_p6 = por %p248_p3, %p56_p0 }
  0x18   : > { %p2679_p8 = pnand %p1962_p5, %p281_p7  ;;  %s2571_s18 = smov [#allocation10]  }
  0x19   : > { %s3171_s15 = scalar_select %p2669_p4, 1, 0 }
  0x1a   : > { %s3172_s16 = scalar_select %p2674_p6, 1, 0 }
  0x1b   : > { %s3174_s17 = scalar_select %p2679_p8, 1, 0 }
  0x1c   : > { %3173 = sst [smem:[#allocation24_spill]] %s3172_s16  ;;  %s293_s19 = sshll.u32 %s2571_s18, 4  ;;  %s2683_s19 = int_to_ptr.vmem [resolvable:$true] %s293_s19 }
  0x1d   : > { %p2186_p9 = pneg %p2679_p8  ;;  %s2695_s21 = sadd.s32 1, %s2569_s12  }
  0x1e   : > { %3176 = sst [smem:[#allocation25_spill]] %s2695_s21  ;;  %s43_s22 = sadd.s32 1, %s2565_s11 }
  0x1f   : > { %p2690_p11 = pnand %p2186_p9, %p3143_p1  ;;  %s40_s23 = ssub.s32 %s2569_s12, %s2695_s21 }
  0x20   : > { %s3177_s4 = sld [smem:[#allocation29_spill]] }
  0x21   : > { %s3175_s20 = scalar_select %p2690_p11, 1, 0 }
  0x22   : > { %p3151_p13 = pneg %p2690_p11 }
  0x26   : > { %s2279_s26 = scalar_lea.hbm %s3177_s4, 1536 }
  0x27   : > { %p2280_p12 = scmp.ne.s32.totalorder %s3177_s4, %s2279_s26  ;;  %p2286_p5 = scmp.lt.u32.totalorder %s2279_s26, %s3177_s4 }
  0x29   : > { %p2282_p0 = pnand %p3151_p13, %p2280_p12 }
  0x2b   : > { %p2283_p3 = pneg %p2282_p0 }
  0x2d   : > { %p2288_p7 = pnand %p2286_p5, %p2283_p3 }
  0x2f   : > { %2291 = shalt.err (!%p2288_p7)
}
  0x30   : > { %s2292_s18 = scalar_lea.vmem %s2683_s19, 1536  ;;  %p2300_p2 = scmp.lt.s32.totalorder %s2683_s19, %s2683_s19 }
  0x31   : > { %p2293_p9 = scmp.ne.s32.totalorder %s2683_s19, %s2292_s18  ;;  %p2301_p12 = scmp.lt.s32.totalorder %s2292_s18, %s2292_s18 }
  0x33   : > { %p2295_p10 = pnand %p2293_p9, %p3151_p13  ;;  %p2302_p0 = por %p2301_p12, %p2300_p2 }
  0x35   : > { %p2296_p1 = pneg %p2295_p10 }
  0x37   : > { %p2303_p6 = pnand %p2302_p0, %p2296_p1 }
  0x39   : > { %2306 = shalt.err (!%p2303_p6)
}
  0x3a   : > { %s3144_s24 = smov 128   ;;  %s3145_s25 = smov 8  }
  0x3b   : > { %2189 = dma.hbm_to_vmem [thread:$0]  (!%p2690_p11), %s3177_s4, 1536, %s2683_s19, [#allocation9], %s3144_s24, %s3144_s24, %s3145_s25  }
  0x3c   : > { %p41_p1 = scmp.eq.s32.totalorder %s40_s23, 0  ;;  %p50_p2 = scmp.ne.s32.totalorder %s2565_s11, %s2561_s10 }
  0x3d   : > { %p51_p6 = scmp.eq.s32.totalorder %s2569_s12, 0  ;;  %p2215_p10 = scmp.lt.s32.totalorder %s2569_s12, 2 }
  0x3e   : > { %s2735_s28 = scalar_select %p41_p1, %s2565_s11, %s43_s22  }
  0x3f   : > { %p52_p3 = por %p51_p6, %p50_p2  ;;  %p3179_p5 = scmp.eq.s32.totalorder %s2660_s13, 1 }
  0x40   : > { %3178 = sst [smem:[#allocation26_spill]] %s2735_s28  ;;  %s3146_s14 = sand.u32 1, %s2565_s11  }
  0x41   : > { %p2739_p7 = por %p3179_p5, %p50_p2  ;;  %s2745_s18 = sshll.u32 %s2569_s12, 7 }
  0x42   : > { %s2749_s26 = sshll.u32 %s3146_s14, 3  ;;  %p2751_p9 = pnand %p2215_p10, %p52_p3 }
  0x43   : > { %s3180_s29 = scalar_select %p2739_p7, 1, 0 }
  0x44   : > { %s3181_s19 = scalar_select %p2751_p9, 1, 0 }
  0x45   : > { %s3153_s22 = sand.u32 1, %s2569_s12   ;;  %s3182_s1 = sld [smem:[#allocation28_spill]] }
  0x46   : > { %s348_s25 = scalar_lea.vmem [#allocation5], %s2749_s26  ;;  %s2767_s14 = scalar_lea.sflag [#allocation6], %s3153_s22 }
  0x47   : > { %s355_s4 = sshll.u32 %s348_s25, 4  ;;  %p2773_p0 = pneg %p2751_p9  ;;  %s2763_s4 = int_to_ptr.vmem [resolvable:$true] %s355_s4 }
  0x49   : > { %s3183_s21 = scalar_select %p2773_p0, 1, 0 }
  0x4b   : > { %s2760_s24 = scalar_lea.hbm %s3182_s1, %s2745_s18  ;;  %s2312_s25 = scalar_lea.hbm %s3182_s1, 256 }
  0x4c   : > { %s2307_s28 = scalar_lea.hbm %s2760_s24, 128  ;;  %p2313_p6 = scmp.lt.u32.totalorder %s2760_s24, %s3182_s1 }
  0x4d   : > { %p2308_p12 = scmp.ne.s32.totalorder %s2760_s24, %s2307_s28  ;;  %p2314_p10 = scmp.lt.u32.totalorder %s2312_s25, %s2307_s28 }
  0x4e   : > { %p2316_p5 = scmp.lt.u32.totalorder %s2307_s28, %s2760_s24 }
  0x4f   : > { %p2310_p1 = pnand %p2773_p0, %p2308_p12  ;;  %p2315_p3 = por %p2314_p10, %p2313_p6 }
  0x51   : > { %p2311_p2 = pneg %p2310_p1  ;;  %p2317_p13 = por %p2316_p5, %p2315_p3 }
  0x53   : > { %p2318_p7 = pnand %p2317_p13, %p2311_p2 }
  0x55   : > { %2321 = shalt.err (!%p2318_p7)
}
  0x56   : > { %s2322_s22 = scalar_lea.vmem %s2763_s4, 128  ;;  %s2574_s23 = smov [#allocation5]  }
  0x57   : > { %p2323_p12 = scmp.ne.s32.totalorder %s2763_s4, %s2322_s22  ;;  %s2327_s27 = sshll.u32 %s2574_s23, 4  ;;  %s2328_s27 = int_to_ptr.vmem [resolvable:$false] %s2327_s27 }
  0x58   : > { %s2329_s30 = scalar_lea.vmem %s2328_s27, 256  ;;  %p2330_p8 = scmp.lt.s32.totalorder %s2763_s4, %s2328_s27 }
  0x59   : > { %p2325_p1 = pnand %p2323_p12, %p2773_p0  ;;  %p2331_p11 = scmp.lt.s32.totalorder %s2329_s30, %s2322_s22 }
  0x5b   : > { %p2326_p4 = pneg %p2325_p1  ;;  %p2332_p6 = por %p2331_p11, %p2330_p8 }
  0x5d   : > { %p2333_p10 = pnand %p2332_p6, %p2326_p4 }
  0x5f   : > { %2336 = shalt.err (!%p2333_p10)
}
  0x60   : > { %2199 = dma.hbm_to_vmem [thread:$0]  (!%p2751_p9), %s2760_s24, 128, %s2763_s4, %s2767_s14  }
  0x61   : > { %s2575_s16 = smov [#allocation11]   ;;  %s3184_s0 = sld [smem:[#allocation27_spill]] }
  0x62   : > { %s309_s28 = sshll.u32 %s2575_s16, 4  ;;  %s2337_s30 = scalar_lea.hbm %s3139_s6, 512  ;;  %s310_s28 = int_to_ptr.vmem [resolvable:$true] %s309_s28 }
  0x63   : > { %p2338_p4 = scmp.ne.s32.totalorder %s3139_s6, %s2337_s30  ;;  %p3185_p8 = scmp.ne.s32.totalorder %s3175_s20, 0 }
  0x64   : > { %p2344_p2 = scmp.lt.u32.totalorder %s2337_s30, %s3139_s6 }
  0x65   : > { %p3186_p11 = pneg %p3185_p8 }
  0x67   : > { %s2801_s1 = scalar_lea.hbm %s3184_s0, %s2745_s18  ;;  %p2340_p13 = pnand %p2338_p4, %p3186_p11 }
  0x69   : > { %p2341_p7 = pneg %p2340_p13 }
  0x6b   : > { %p2346_p3 = pnand %p2344_p2, %p2341_p7 }
  0x6d   : > { %2349 = shalt.err (!%p2346_p3)
}
  0x6e   : > { %s2350_s16 = scalar_lea.vmem %s310_s28, 512  ;;  %p3187_p12 = pmov %p3186_p11 }
  0x6f   : > { %p2351_p5 = scmp.ne.s32.totalorder %s310_s28, %s2350_s16  ;;  %p2358_p10 = scmp.lt.s32.totalorder %s310_s28, %s310_s28 }
  0x70   : > { %p2359_p9 = scmp.lt.s32.totalorder %s2350_s16, %s2350_s16 }
  0x71   : > { %p2353_p1 = pnand %p2351_p5, %p3187_p12 }
  0x72   : > { %p2360_p0 = por %p2359_p9, %p2358_p10 }
  0x73   : > { %p2354_p6 = pneg %p2353_p1 }
  0x75   : > { %p2361_p4 = pnand %p2360_p0, %p2354_p6 }
  0x77   : > { %2364 = shalt.err (!%p2361_p4)
}
  0x78   : > { %s3188_s7 = smov 8   ;;  %s3189_s8 = smov 128  }
  0x79   : > { %2192 = dma.hbm_to_vmem [thread:$0]  (!%p3185_p8), %s3139_s6, 512, %s310_s28, [#allocation12], %s3189_s8, %s3189_s8, %s3188_s7  }
  0x7a   : > { %s330_s22 = scalar_lea.vmem [#allocation2], %s2749_s26  ;;  %s2833_s4 = scalar_lea.hbm %s3135_s2, %s2745_s18 }
  0x7b   : > { %s337_s27 = sshll.u32 %s330_s22, 4  ;;  %s3190_s24 = sand.u32 1, %s2565_s11   ;;  %s2827_s27 = int_to_ptr.vmem [resolvable:$true] %s337_s27 }
  0x7c   : > { %s327_s16 = scalar_lea.sflag [#allocation3], %s3190_s24  ;;  %s2365_s25 = scalar_lea.hbm %s2801_s1, 128 }
  0x7d   : > { %p2366_p9 = scmp.ne.s32.totalorder %s2801_s1, %s2365_s25  ;;  %p3191_p0 = scmp.ne.s32.totalorder %s3183_s21, 0 }
  0x7e   : > { %s2370_s28 = scalar_lea.hbm %s3184_s0, 256  ;;  %p2371_p8 = scmp.lt.u32.totalorder %s2801_s1, %s3184_s0 }
  0x7f   : > { %p2368_p11 = pnand %p2366_p9, %p3191_p0  ;;  %p2372_p7 = scmp.lt.u32.totalorder %s2370_s28, %s2365_s25 }
  0x80   : > { %p2374_p3 = scmp.lt.u32.totalorder %s2365_s25, %s2801_s1 }
  0x81   : > { %p2369_p13 = pneg %p2368_p11  ;;  %p2373_p2 = por %p2372_p7, %p2371_p8 }
  0x83   : > { %p2375_p5 = por %p2374_p3, %p2373_p2 }
  0x85   : > { %p2376_p12 = pnand %p2375_p5, %p2369_p13 }
  0x87   : > { %2379 = shalt.err (!%p2376_p12)
}
  0x88   : > { %s2380_s22 = scalar_lea.vmem %s2827_s27, 128  ;;  %s2576_s9 = smov [#allocation2]  }
  0x89   : > { %p2381_p1 = scmp.ne.s32.totalorder %s2827_s27, %s2380_s22  ;;  %s2385_s20 = sshll.u32 %s2576_s9, 4  ;;  %s2386_s20 = int_to_ptr.vmem [resolvable:$false] %s2385_s20 }
  0x8a   : > { %s2387_s30 = scalar_lea.vmem %s2386_s20, 256  ;;  %p2388_p4 = scmp.lt.s32.totalorder %s2827_s27, %s2386_s20 }
  0x8b   : > { %p2383_p6 = pnand %p2381_p1, %p3191_p0  ;;  %p2389_p9 = scmp.lt.s32.totalorder %s2387_s30, %s2380_s22 }
  0x8d   : > { %p2384_p10 = pneg %p2383_p6  ;;  %p2390_p11 = por %p2389_p9, %p2388_p4 }
  0x8f   : > { %p2391_p8 = pnand %p2390_p11, %p2384_p10 }
  0x91   : > { %2394 = shalt.err (!%p2391_p8)
}
  0x92   : > { %p3192_p13 = scmp.ne.s32.totalorder %s3181_s19, 0  ;;  %s366_s24 = scalar_lea.vmem [#allocation7], %s2749_s26 }
  0x93   : > { %s373_s25 = sshll.u32 %s366_s24, 4  ;;  %s2863_s7 = scalar_lea.hbm %s3136_s3, %s2745_s18  ;;  %s374_s25 = int_to_ptr.vmem [resolvable:$true] %s373_s25 }
  0x94   : > { %2196 = dma.hbm_to_vmem [thread:$0]  (!%p3192_p13), %s2801_s1, 128, %s2827_s27, %s327_s16  }
  0x95   : > { %s2395_s8 = scalar_lea.hbm %s2833_s4, 128  ;;  %s2400_s20 = scalar_lea.hbm %s3135_s2, 256 }
  0x96   : > { %p2396_p7 = scmp.ne.s32.totalorder %s2833_s4, %s2395_s8  ;;  %p2401_p5 = scmp.lt.u32.totalorder %s2833_s4, %s3135_s2 }
  0x97   : > { %p2402_p12 = scmp.lt.u32.totalorder %s2400_s20, %s2395_s8  ;;  %p2404_p6 = scmp.lt.u32.totalorder %s2395_s8, %s2833_s4 }
  0x98   : > { %p2398_p2 = pnand %p2396_p7, %p3191_p0 }
  0x99   : > { %p2403_p1 = por %p2402_p12, %p2401_p5 }
  0x9a   : > { %p2399_p3 = pneg %p2398_p2 }
  0x9b   : > { %p2405_p10 = por %p2404_p6, %p2403_p1 }
  0x9d   : > { %p2406_p4 = pnand %p2405_p10, %p2399_p3 }
  0x9f   : > { %2409 = shalt.err (!%p2406_p4)
}
  0xa0   : > { %s2410_s1 = scalar_lea.vmem %s374_s25, 128  ;;  %s2577_s18 = smov [#allocation7]  }
  0xa1   : > { %p2411_p9 = scmp.ne.s32.totalorder %s374_s25, %s2410_s1  ;;  %s2415_s27 = sshll.u32 %s2577_s18, 4  ;;  %s2416_s27 = int_to_ptr.vmem [resolvable:$false] %s2415_s27 }
  0xa2   : > { %s2417_s16 = scalar_lea.vmem %s2416_s27, 256  ;;  %p2418_p7 = scmp.lt.s32.totalorder %s374_s25, %s2416_s27 }
  0xa3   : > { %p2413_p11 = pnand %p2411_p9, %p3191_p0  ;;  %p2419_p2 = scmp.lt.s32.totalorder %s2417_s16, %s2410_s1 }
  0xa5   : > { %p2414_p8 = pneg %p2413_p11  ;;  %p2420_p13 = por %p2419_p2, %p2418_p7 }
  0xa7   : > { %p2421_p5 = pnand %p2420_p13, %p2414_p8 }
  0xa9   : > { %2424 = shalt.err (!%p2421_p5)
}
  0xaa   : > { %p3193_p12 = scmp.ne.s32.totalorder %s3181_s19, 0  ;;  %s384_s0 = scalar_lea.vmem [#allocation8], %s2749_s26 }
  0xab   : > { %s391_s24 = sshll.u32 %s384_s0, 4  ;;  %s3194_s23 = sand.u32 1, %s2569_s12   ;;  %s392_s24 = int_to_ptr.vmem [resolvable:$true] %s391_s24 }
  0xac   : > { %2202 = dma.hbm_to_vmem [thread:$0]  (!%p3193_p12), %s2833_s4, 128, %s374_s25, %s2767_s14  }
  0xad   : > { %s381_s28 = scalar_lea.sflag [#allocation9], %s3194_s23  ;;  %s2425_s8 = scalar_lea.hbm %s2863_s7, 128 }
  0xae   : > { %p2426_p13 = scmp.ne.s32.totalorder %s2863_s7, %s2425_s8  ;;  %s2430_s20 = scalar_lea.hbm %s3136_s3, 256 }
  0xaf   : > { %p2431_p6 = scmp.lt.u32.totalorder %s2863_s7, %s3136_s3  ;;  %p2432_p10 = scmp.lt.u32.totalorder %s2430_s20, %s2425_s8 }
  0xb0   : > { %p2428_p3 = pnand %p2426_p13, %p3191_p0  ;;  %p2434_p9 = scmp.lt.u32.totalorder %s2425_s8, %s2863_s7 }
  0xb1   : > { %p2433_p4 = por %p2432_p10, %p2431_p6 }
  0xb2   : > { %p2429_p1 = pneg %p2428_p3 }
  0xb3   : > { %p2435_p11 = por %p2434_p9, %p2433_p4 }
  0xb5   : > { %p2436_p8 = pnand %p2435_p11, %p2429_p1 }
  0xb7   : > { %2439 = shalt.err (!%p2436_p8)
}
  0xb8   : > { %s2440_s14 = scalar_lea.vmem %s392_s24, 128  ;;  %s2578_s26 = smov [#allocation8]  }
  0xb9   : > { %p2441_p7 = scmp.ne.s32.totalorder %s392_s24, %s2440_s14  ;;  %s2445_s4 = sshll.u32 %s2578_s26, 4  ;;  %s2446_s4 = int_to_ptr.vmem [resolvable:$false] %s2445_s4 }
  0xba   : > { %s2447_s25 = scalar_lea.vmem %s2446_s4, 256  ;;  %p2448_p13 = scmp.lt.s32.totalorder %s392_s24, %s2446_s4 }
  0xbb   : > { %p2443_p2 = pnand %p2441_p7, %p3191_p0  ;;  %p2449_p3 = scmp.lt.s32.totalorder %s2447_s25, %s2440_s14 }
  0xbd   : > { %p2444_p5 = pneg %p2443_p2  ;;  %p2450_p12 = por %p2449_p3, %p2448_p13 }
  0xbf   : > { %p2451_p6 = pnand %p2450_p12, %p2444_p5 }
  0xc1   : > { %2454 = shalt.err (!%p2451_p6)
}
  0xc2   : > { %p3195_p10 = scmp.ne.s32.totalorder %s3181_s19, 0  ;;  %p3196_p1 = scmp.ne.s32.totalorder %s3174_s17, 0 }
  0xc3   : > { %s2906_s21 = sand.u32 (!%p3196_p1), 1, %s2561_s10   ;;  %p3197_p0 = scmp.ne.s32.totalorder (!%p3196_p1), %s3171_s15, 0 }
  0xc4   : > { %2205 = dma.hbm_to_vmem [thread:$0]  (!%p3195_p10), %s2863_s7, 128, %s392_s24, %s381_s28  }
  0xc5   : > { %400 = sbr.rel (%p3196_p1) target bundleno = 1544 (0x608), region = 52  ;;  %s2909_s18 = sshll.u32 (!%p3196_p1), %s2906_s21, 3 }
  0xc6   : > { %s403_s27 = scalar_lea.sflag (!%p3196_p1), [#allocation3], %s2906_s21  ;;  %s406_s16 = scalar_lea.vmem (!%p3196_p1), [#allocation2], %s2909_s18 }
  0xcc   : > { %2528 = dma.done.wait (%p3197_p0), %s403_s27, 128  }
  0xcd   : > { %2530 = vsyncadd (%p3197_p0), %s403_s27, 4294967168  ;;  %s411_s17 = sand.u32 1, %s2660_s13   ;;  %s415_s7 = scalar_lea.vmem [#allocation5], %s2909_s18 }
  0xce   : > { %s412_s19 = scalar_lea.sflag [#allocation6], %s411_s17 }
  0xcf   : > { %2532 = dma.done.wait (%p3197_p0), %s412_s19, 256  }
  0xd0   : > { %2534 = vsyncadd (%p3197_p0), %s412_s19, 4294967040  ;;  %s424_s0 = scalar_lea.vmem [#allocation7], %s2909_s18  ;;  %s430_s24 = scalar_lea.sflag [#allocation9], %s411_s17 }
  0xd1   : > { %s433_s23 = scalar_lea.vmem [#allocation8], %s2909_s18 }
  0xd2   : > { %2536 = dma.done.wait (%p3197_p0), %s430_s24, 128  }
  0xd3   : > { %2538 = vsyncadd (%p3197_p0), %s430_s24, 4294967168  ;;  %p3198_p12 = scmp.eq.s32.totalorder %s2660_s13, 0 }
  0xd5   : > { %2540 = dma.done.wait (%p3198_p12), [#allocation9], 1536   ;;  %p3199_p4 = pmov %p3198_p12 }
  0xd7   : > { %2542 = vsyncadd (%p3199_p4), [#allocation9], 4294965760  ;;  %p3200_p9 = pmov %p3199_p4 }
  0xd8   : > { %p3201_p11 = pmov %p3199_p4 }
  0xd9   : > { %2544 = dma.done.wait (%p3200_p9), [#allocation12], 512  }
  0xda   : > { %2546 = vsyncadd (%p3201_p11), [#allocation12], 4294966784  ;;  %v2579_v0 = vmov 0.0|0.0   ;;  %vm2580_vm0 = vmmov 0   ;;  %v2581_v1 = vmov 0.0   ;;  %v501_v2 = vld [vmem:[#allocation10] sm:$0xff] }
  0xdb   : > { %2148 = vmatprep.subr.bf16.mxu0 %v2579_v0  ;;  %2154 = vmatprep.subr.bf16.mxu1 %v2579_v0  ;;  %v502_v3 = vld [vmem:[#allocation10 + $0x8] sm:$0xff]  ;;  %v587_v4 = vld [vmem:[#allocation10 + $0x20] sm:$0xff]  ;;  %v503_v7 = vld [vmem:[#allocation10 + $0x10] sm:$0xff]  ;;  %vm512_vm1 = vcmask 261120   ;;  %vm782_vm2 = vcmask 64512   ;;  %s2582_s9 = smov 120  }
  0xdc   : > { %2063 = vmatprep.mubr.msk.f32.mxu0 %vm2580_vm0, %v2581_v1  ;;  %2074 = vmatprep.mubr.msk.f32.mxu1 %vm2580_vm0, %v2581_v1  ;;  %v2149_v5 = vpack.c.bf16 %v502_v3, %v501_v2  ;;  %v588_v6 = vld [vmem:[#allocation10 + $0x28] sm:$0xff]  ;;  %v504_v8 = vld [vmem:[#allocation10 + $0x18] sm:$0xff]  ;;  %v589_v10 = vld [vmem:[#allocation10 + $0x30] sm:$0xff]  ;;  %s2583_s20 = smov 104   ;;  %s2584_s30 = smov 112  }
  0xdd   : > { %v2155_v9 = vpack.c.bf16 %v588_v6, %v587_v4  ;;  %v590_v11 = vld [vmem:[#allocation10 + $0x38] sm:$0xff]  ;;  %v2152_v12 = vpack.c.bf16 %v504_v8, %v503_v7  ;;  %v497_v15 = vld [vmem:[%s424_s0] sm:$0xff]  ;;  %v675_v18 = vld [vmem:[#allocation10 + $0x50] sm:$0xff]  ;;  %s1982_s26 = sshll.u32 %s2906_s21, 5  ;;  %s2015_s25 = sshll.u32 %s2660_s13, 9 }
  0xde   : > { %2150 = vmatpush3.bf16.msra.mxu0 %v2149_v5  ;;  %v2158_v13 = vpack.c.bf16 %v590_v11, %v589_v10  ;;  %v496_v14 = vld [vmem:[%s415_s7] sm:$0xff]  ;;  %v673_v16 = vld [vmem:[#allocation10 + $0x40] sm:$0xff]  ;;  %v674_v17 = vld [vmem:[#allocation10 + $0x48] sm:$0xff]  ;;  %s3009_s4 = scalar_lea.vmem [#allocation14], %s1982_s26  ;;  %s3202_s19 = sld [smem:[#allocation32_spill]] }
  0xdf   : > { %2156 = vmatpush3.bf16.msra.mxu1 %v2155_v9  ;;  %2151 = vmatprep.subr.bf16.mxu0 %v2579_v0  ;;  %v2161_v19 = vpack.c.bf16 %v674_v17, %v673_v16  ;;  %v676_v20 = vld [vmem:[#allocation10 + $0x58] sm:$0xff]  ;;  %v1983_v23 = vld [vmem:[%s3138_s5] ss:$0 sm:$0xff]  ;;  %v1986_v24 = vld [vmem:[%s3138_s5 + $0x1] ss:$0 sm:$0xff]  ;;  %s1771_s27 = sshll.u32 %s3009_s4, 4  ;;  %s3050_s27 = int_to_ptr.vmem [resolvable:$true] %s1771_s27 }
  0xe0   : > { %2157 = vmatprep.subr.bf16.mxu1 %v2579_v0  ;;  %v2164_v21 = vpack.c.bf16 %v676_v20, %v675_v18  ;;  %v498_v22 = vld [vmem:[%s433_s23] sm:$0xff]  ;;  %v1989_v37 = vld [vmem:[%s3138_s5 + $0x2] ss:$0 sm:$0xff]  ;;  %s1745_s0 = scalar_lea.sflag [#allocation15], %s2906_s21  ;;  %s2455_s24 = scalar_lea.vmem %s3050_s27, 512 }
  0xe1   : > { %v499_v41 = vld [vmem:[%s406_s16] sm:$0xff]  ;;  %p2456_p8 = scmp.ne.s32.totalorder %s3050_s27, %s2455_s24  ;;  %p3203_p7 = scmp.ne.s32.totalorder %s3180_s29, 0 }
  0xe2   : > { %2153 = vmatpush3.bf16.msra.mxu0 %v2152_v12  ;;  %v500_v42 = vmul.f32 -1e+09, %v499_v41  ;;  %s2585_s23 = smov [#allocation14]  }
  0xe3   : > { %2159 = vmatpush3.bf16.msra.mxu1 %v2158_v13  ;;  %2160 = vmatprep.subr.bf16.mxu0 %v2579_v0  ;;  %p2457_p2 = pnand %p2456_p8, %p3203_p7  ;;  %s2459_s15 = sshll.u32 %s2585_s23, 4  ;;  %s2460_s15 = int_to_ptr.vmem [resolvable:$false] %s2459_s15 }
  0xe4   : > { %2088 = vmatprep.subr.mxu1 %v2581_v1  ;;  %s3048_s7 = scalar_lea.hbm %s3202_s19, %s2015_s25  ;;  %s2461_s28 = scalar_lea.vmem %s2460_s15, 1024 }
  0xe5   : > { %2064 = vmatmul.mubr.msk.f32.vlgmr.msra.gmra.mrb[0].mxu0 %vm512_vm1, %v496_v14  ;;  %p2458_p5 = pneg %p2457_p2  ;;  %p2462_p13 = scmp.lt.s32.totalorder %s3050_s27, %s2460_s15 }
  0xe6   : > { %2075 = vmatmul.mubr.msk.f32.vlgmr.msra.gmra.mrb[0].mxu1 %vm512_vm1, %v497_v15  ;;  %2085 = vmatprep.mubr.msk.f32.mxu0 %vm2580_vm0, %v2581_v1  ;;  %p2463_p3 = scmp.lt.s32.totalorder %s2461_s28, %s2455_s24 }
  0xe7   : > { %2090 = vmatprep.mubr.msk.f32.mxu1 %vm2580_vm0, %v2581_v1  ;;  %2162 = vmatpush3.bf16.msra.mxu0 %v2161_v19 }
  0xe8   : > { %2163 = vmatprep.subr.bf16.mxu0 %v2579_v0  ;;  %p2464_p6 = por %p2463_p3, %p2462_p13 }
  0xea   : > { %p2465_p10 = pnand %p2464_p6, %p2458_p5 }
  0xeb   : > { %2165 = vmatpush3.bf16.msra.mxu0 %v2164_v21 }
  0xec   : > { %2098 = vmatprep.subr.mxu0 %v2581_v1 }
  0xee   : > { %2086 = vmatmul.mubr.msk.f32.vlgmr.msra.gmra.mrb[2].mxu0 %vm512_vm1, %v498_v22 }
  0xef   : > { %2100 = vmatprep.mubr.msk.f32.mxu0 %vm2580_vm0, %v2581_v1 }
 0x1b8   : > { %v582_v25 = vpop.f32.mrb[0].mxu0 }
 0x1b9   : > { %v583_v26 = vadd.f32 %v1983_v23, %v582_v25  ;;  %v668_v27 = vpop.f32.mrb[0].mxu1  ;;  %v2065_v28 = vpop.f32.mrb[1].mxu0 }
 0x1ba   : > { %v669_v29 = vadd.f32 %v1986_v24, %v668_v27  ;;  %v2076_v30 = vpop.f32.mrb[1].mxu1 }
 0x1bb   : > { %759 = vrot.lane.b32.xlu1 %v583_v26, %s2582_s9 }
 0x1bc   : > { %766 = vrot.lane.b32.xlu0 %v669_v29, %s2582_s9  ;;  %2089 = vmatpush3.xpose.msk.msra.mxu1 %vm782_vm2, %v669_v29 }
 0x1bd   : > { %2093 = vmatprep.subr.mxu1 %v2581_v1 }
 0x1bf   : > { %2091 = vmatmul.mubr.msk.f32.vlgmr.msra.gmra.mrb[2].mxu1 %vm782_vm2, %v583_v26  ;;  %770 = vrot.lane.b32.xlu1 %v669_v29, %s2583_s20 }
 0x1c0   : > { %768 = vrot.lane.b32.xlu0 %v669_v29, %s2584_s30  ;;  %2095 = vmatprep.mubr.msk.f32.mxu1 %vm2580_vm0, %v2581_v1 }
 0x1c1   : > { %v754_v38 = vpop.f32.mrb[2].mxu0 }
 0x1c2   : > { %v755_v39 = vadd.f32 %v1989_v37, %v754_v38  ;;  %v2087_v40 = vpop.f32.mrb[3].mxu0  ;;  %v1429_v37 = vld [vmem:[#allocation11 + $0x10] sm:$0xff] }
 0x1c3   : > { %763 = vrot.lane.b32.xlu1 %v583_v26, %s2583_s20  ;;  %v1430_v40 = vld [vmem:[#allocation11 + $0x18] sm:$0xff] }
 0x1c4   : > { %761 = vrot.lane.b32.xlu0 %v583_v26, %s2584_s30 }
 0x22d   : > { %v760_v31 = vpop.permute.xlu1 %759 }
 0x22e   : > { %v767_v32 = vpop.permute.xlu0 %766 }
 0x22f   : > { %2094 = vmatpush3.xpose.msk.msra.mxu1 %vm782_vm2, %v767_v32 }
 0x230   : > { %2103 = vmatprep.subr.mxu1 %v2581_v1 }
 0x231   : > { %v771_v33 = vpop.permute.xlu1 %770 }
 0x232   : > { %v769_v34 = vpop.permute.xlu0 %768  ;;  %2096 = vmatmul.mubr.msk.f32.vlgmr.msra.gmra.mrb[4].mxu1 %vm782_vm2, %v760_v31 }
 0x233   : > { %2099 = vmatpush3.xpose.msk.msra.mxu0 %vm782_vm2, %v769_v34  ;;  %2104 = vmatpush3.xpose.msk.msra.mxu1 %vm782_vm2, %v771_v33  ;;  %v1427_v33 = vld [vmem:[#allocation11] sm:$0xff] }
 0x234   : > { %2105 = vmatprep.mubr.msk.f32.mxu1 %vm2580_vm0, %v2581_v1  ;;  %2108 = vmatprep.subr.mxu0 %v2581_v1 }
 0x235   : > { %v764_v35 = vpop.permute.xlu1 %763  ;;  %2113 = vmatprep.subr.mxu1 %v2581_v1 }
 0x236   : > { %v762_v36 = vpop.permute.xlu0 %761  ;;  %2106 = vmatmul.mubr.msk.f32.vlgmr.msra.gmra.mrb[6].mxu1 %vm782_vm2, %v764_v35 }
 0x237   : > { %2101 = vmatmul.mubr.msk.f32.vlgmr.msra.gmra.mrb[4].mxu0 %vm782_vm2, %v762_v36  ;;  %2115 = vmatprep.mubr.msk.f32.mxu1 %vm2580_vm0, %v2581_v1  ;;  %v1428_v36 = vld [vmem:[#allocation11 + $0x8] sm:$0xff] }
 0x238   : > { %2110 = vmatprep.mubr.msk.f32.mxu0 %vm2580_vm0, %v2581_v1  ;;  %2109 = vmatpush3.msra.mxu0 %v755_v39 }
 0x239   : > { %2118 = vmatprep.subr.mxu0 %v2581_v1 }
 0x292   : > { %v853_v43 = vpop.f32.mrb[2].mxu1 }
 0x293   : > { %v1079_v44 = vmul.f32 0.35355338, %v853_v43  ;;  %v2092_v45 = vpop.f32.mrb[3].mxu1 }
 0x295   : > { %v1083_v46 = vadd.f32 %v1079_v44, %v500_v42 }
 0x297   : > { %v1087_v47 = vsel %vm782_vm2, %v1083_v46, -inf }
 0x298   : > { %1088 = vmax.xlane.f32.xlu0 %v1087_v47 }
 0x305   : > { %v927_v48 = vpop.f32.mrb[4].mxu1 }
 0x306   : > { %v1080_v49 = vmul.f32 0.35355338, %v927_v48  ;;  %v2097_v50 = vpop.f32.mrb[5].mxu1 }
 0x308   : > { %v1084_v51 = vadd.f32 %v1080_v49, %v500_v42 }
 0x309   : > { %v1075_v52 = vpop.f32.mrb[6].mxu1 }
 0x30a   : > { %v1001_v53 = vpop.f32.mrb[4].mxu0  ;;  %v1090_v54 = vsel %vm782_vm2, %v1084_v51, -inf  ;;  %v2107_v55 = vpop.f32.mrb[7].mxu1  ;;  %v1082_v57 = vmul.f32 0.35355338, %v1075_v52 }
 0x30b   : > { %v1081_v56 = vmul.f32 0.35355338, %v1001_v53  ;;  %1091 = vmax.xlane.f32.xlu1 %v1090_v54  ;;  %v2102_v58 = vpop.f32.mrb[5].mxu0 }
 0x30c   : > { %v1086_v61 = vadd.f32 %v1082_v57, %v500_v42 }
 0x30d   : > { %v1085_v59 = vadd.f32 %v1081_v56, %v500_v42 }
 0x30e   : > { %v1096_v62 = vsel %vm782_vm2, %v1086_v61, -inf }
 0x30f   : > { %v1093_v60 = vsel %vm782_vm2, %v1085_v59, -inf }
 0x310   : > { %1094 = vmax.xlane.f32.xlu0 %v1093_v60 }
 0x314   : > { %1097 = vmax.xlane.f32.xlu0 %v1096_v62 }
 0x31c   : > { %773 = vrot.lane.b32.xlu1 %v755_v39, %s2582_s9 }
 0x325   : > { %v1089_v63 = vpop.xlane.xlu0 %1088 }
 0x326   : > { %v1099_v0 = vsub.f32 %v1083_v46, %v1089_v63 }
 0x328   : > { %v1103_v2 = vmul.f32 1.442695, %v1099_v0 }
 0x32a   : > { %2263 = vpow2.f32 %v1103_v2 }
 0x334   : > { %v2264_v3 = vpop.eup %2263 }
 0x335   : > { %v1111_v4 = vsel %vm782_vm2, %v2264_v3, 0.0 }
 0x340   : > { %1112 = vadd.xlane.f32.xlu1 %v1111_v4 }
 0x398   : > { %v1092_v5 = vpop.xlane.xlu1 %1091 }
 0x399   : > { %v1100_v6 = vsub.f32 %v1084_v51, %v1092_v5 }
 0x39b   : > { %v1105_v7 = vmul.f32 1.442695, %v1100_v6 }
 0x39c   : > { %v774_v8 = vpop.permute.xlu1 %773 }
 0x39d   : > { %2265 = vpow2.f32 %v1105_v7  ;;  %2114 = vmatpush3.msra.mxu1 %v774_v8  ;;  %v1095_v9 = vpop.xlane.xlu0 %1094 }
 0x39e   : > { %v1101_v10 = vsub.f32 %v1085_v59, %v1095_v9  ;;  %2123 = vmatprep.subr.mxu1 %v2581_v1 }
 0x3a0   : > { %v1107_v11 = vmul.f32 1.442695, %v1101_v10 }
 0x3a1   : > { %v1098_v12 = vpop.xlane.xlu0 %1097 }
 0x3a2   : > { %2267 = vpow2.f32 %v1107_v11  ;;  %v1102_v13 = vsub.f32 %v1086_v61, %v1098_v12 }
 0x3a4   : > { %v1109_v14 = vmul.f32 1.442695, %v1102_v13 }
 0x3a6   : > { %2269 = vpow2.f32 %v1109_v14 }
 0x3a7   : > { %v2266_v15 = vpop.eup %2265 }
 0x3a8   : > { %v1114_v16 = vsel %vm782_vm2, %v2266_v15, 0.0 }
 0x3a9   : > { %1115 = vadd.xlane.f32.xlu0 %v1114_v16 }
 0x3ac   : > { %v2268_v17 = vpop.eup %2267 }
 0x3ad   : > { %v1117_v18 = vsel %vm782_vm2, %v2268_v17, 0.0 }
 0x3ae   : > { %1118 = vadd.xlane.f32.xlu1 %v1117_v18 }
 0x3b0   : > { %v2270_v19 = vpop.eup %2269 }
 0x3b1   : > { %v1120_v20 = vsel %vm782_vm2, %v2270_v19, 0.0 }
 0x3b2   : > { %1121 = vadd.xlane.f32.xlu0 %v1120_v20 }
 0x3bf   : > { %779 = vrot.lane.b32.xlu1 %v755_v39, %s2583_s20 }
 0x3c8   : > { %776 = vrot.lane.b32.xlu0 %v755_v39, %s2584_s30 }
 0x3cd   : > { %v1113_v21 = vpop.xlane.xlu1 %1112 }
 0x3ce   : > { %2271 = vrcp.f32 %v1113_v21 }
 0x3d8   : > { %v2272_v22 = vpop.eup %2271 }
 0x3d9   : > { %v1127_v23 = vmul.f32 %v2272_v22, %v2264_v3 }
 0x3db   : > { %1131 = vst.msk [vmem:[%s3009_s4] sm:$0xff] %vm782_vm2, %v1127_v23  ;;  %2111 = vmatmul.mubr.msk.f32.vlgmr.msra.gmra.mrb[6].mxu0 %vm782_vm2, %v1127_v23 }
 0x3dc   : > { %2120 = vmatprep.mubr.msk.f32.mxu0 %vm2580_vm0, %v2581_v1 }
 0x436   : > { %v1116_v24 = vpop.xlane.xlu0 %1115 }
 0x437   : > { %2273 = vrcp.f32 %v1116_v24 }
 0x43b   : > { %v1119_v25 = vpop.xlane.xlu1 %1118 }
 0x43c   : > { %2275 = vrcp.f32 %v1119_v25 }
 0x43f   : > { %v1122_v26 = vpop.xlane.xlu0 %1121  ;;  %v780_v30 = vpop.permute.xlu1 %779 }
 0x440   : > { %2277 = vrcp.f32 %v1122_v26 }
 0x441   : > { %v2274_v27 = vpop.eup %2273 }
 0x442   : > { %v1128_v28 = vmul.f32 %v2274_v27, %v2266_v15 }
 0x443   : > { %v777_v29 = vpop.permute.xlu0 %776 }
 0x444   : > { %1132 = vst.msk [vmem:[%s3009_s4 + $0x8] sm:$0xff] %vm782_vm2, %v1128_v28  ;;  %2116 = vmatmul.mubr.msk.f32.vlgmr.msra.gmra.mrb[8].mxu1 %vm782_vm2, %v1128_v28  ;;  %2119 = vmatpush3.msra.mxu0 %v777_v29 }
 0x445   : > { %2124 = vmatpush3.msra.mxu1 %v780_v30  ;;  %2125 = vmatprep.mubr.msk.f32.mxu1 %vm2580_vm0, %v2581_v1 }
 0x446   : > { %v2276_v31 = vpop.eup %2275  ;;  %2128 = vmatprep.subr.mxu0 %v2581_v1  ;;  %2133 = vmatprep.subr.mxu1 %v2581_v1 }
 0x447   : > { %v1129_v32 = vmul.f32 %v2276_v31, %v2268_v17 }
 0x449   : > { %1133 = vst.msk [vmem:[%s3009_s4 + $0x10] sm:$0xff] %vm782_vm2, %v1129_v32  ;;  %2121 = vmatmul.mubr.msk.f32.vlgmr.msra.gmra.mrb[8].mxu0 %vm782_vm2, %v1129_v32 }
 0x44a   : > { %v2278_v34 = vpop.eup %2277  ;;  %2129 = vmatpush3.msra.mxu0 %v1427_v33  ;;  %2130 = vmatprep.mubr.msk.f32.mxu0 %vm2580_vm0, %v2581_v1 }
 0x44b   : > { %v1130_v35 = vmul.f32 %v2278_v34, %v2270_v19  ;;  %2138 = vmatprep.subr.mxu0 %v2581_v1 }
 0x44d   : > { %1134 = vst.msk [vmem:[%s3009_s4 + $0x18] sm:$0xff] %vm782_vm2, %v1130_v35  ;;  %2126 = vmatmul.mubr.msk.f32.vlgmr.msra.gmra.mrb[10].mxu1 %vm782_vm2, %v1130_v35 }
 0x44e   : > { %2135 = vmatprep.mubr.msk.f32.mxu1 %vm2580_vm0, %v2581_v1  ;;  %2134 = vmatpush3.msra.mxu1 %v1428_v36 }
 0x44f   : > { %2143 = vmatprep.subr.mxu1 %v2581_v1 }
 0x4ae   : > { %v1204_v38 = vpop.f32.mrb[6].mxu0 }
 0x4af   : > { %v2112_v39 = vpop.f32.mrb[7].mxu0  ;;  %2131 = vmatmul.mubr.msk.f32.vlgmr.msra.gmra.mrb[10].mxu0 %vm782_vm2, %v1204_v38 }
 0x4b0   : > { %2139 = vmatpush3.msra.mxu0 %v1429_v37  ;;  %2140 = vmatprep.mubr.msk.f32.mxu0 %vm2580_vm0, %v2581_v1 }
 0x517   : > { %v1277_v41 = vpop.f32.mrb[8].mxu1 }
 0x518   : > { %v2117_v42 = vpop.f32.mrb[9].mxu1  ;;  %2136 = vmatmul.mubr.msk.f32.vlgmr.msra.gmra.mrb[12].mxu1 %vm782_vm2, %v1277_v41 }
 0x519   : > { %2144 = vmatpush3.msra.mxu1 %v1430_v40  ;;  %2145 = vmatprep.mubr.msk.f32.mxu1 %vm2580_vm0, %v2581_v1 }
 0x51c   : > { %v1350_v43 = vpop.f32.mrb[8].mxu0 }
 0x51d   : > { %v2122_v44 = vpop.f32.mrb[9].mxu0  ;;  %2141 = vmatmul.mubr.msk.f32.vlgmr.msra.gmra.mrb[12].mxu0 %vm782_vm2, %v1350_v43 }
 0x520   : > { %v1423_v45 = vpop.f32.mrb[10].mxu1 }
 0x521   : > { %v2127_v46 = vpop.f32.mrb[11].mxu1  ;;  %2146 = vmatmul.mubr.msk.f32.vlgmr.msra.gmra.mrb[14].mxu1 %vm782_vm2, %v1423_v45 }
 0x522   : > { %2468 = shalt.err (!%p2465_p10)
}
 0x523   : > { %s2469_s8 = scalar_lea.hbm %s3048_s7, 512  ;;  %s2473_s20 = scalar_lea.hbm %s3202_s19, 1024 }
 0x524   : > { %p2470_p1 = scmp.ne.s32.totalorder %s3048_s7, %s2469_s8  ;;  %p2474_p4 = scmp.lt.u32.totalorder %s3048_s7, %s3202_s19 }
 0x525   : > { %p2475_p9 = scmp.lt.u32.totalorder %s2473_s20, %s2469_s8  ;;  %p2477_p8 = scmp.lt.u32.totalorder %s2469_s8, %s3048_s7 }
 0x526   : > { %p2471_p0 = pnand %p2470_p1, %p3203_p7 }
 0x527   : > { %p2476_p11 = por %p2475_p9, %p2474_p4 }
 0x528   : > { %p2472_p12 = pneg %p2471_p0 }
 0x529   : > { %p2478_p2 = por %p2477_p8, %p2476_p11 }
 0x52b   : > { %p2479_p5 = pnand %p2478_p2, %p2472_p12 }
 0x52d   : > { %2482 = shalt.err (!%p2479_p5)
}
 0x52e   : > { %s2586_s14 = smov 128   ;;  %s2587_s26 = smov 8  }
 0x52f   : > { %2183 = dma.vmem_to_hbm [thread:$0]  (%p3203_p7), %s3050_s27, 512, %s3048_s7, %s1745_s0, %s2586_s14, %s2586_s14, %s2587_s26  }
 0x530   : > { %s3204_s27 = sld [smem:[#allocation30_spill]]  ;;  %s2010_s16 = sshll.u32 %s2660_s13, 7 }
 0x531   : > { %s488_s17 = scalar_lea.vmem [#allocation13], %s2909_s18  ;;  %s3205_s23 = sld [smem:[#allocation31_spill]] }
 0x532   : > { %s1758_s7 = sshll.u32 %s488_s17, 4  ;;  %s1740_s28 = scalar_lea.sflag [#allocation4], %s2906_s21  ;;  %s3090_s7 = int_to_ptr.vmem [resolvable:$true] %s1758_s7 }
 0x533   : > { %s2483_s8 = scalar_lea.vmem %s3090_s7, 128  ;;  %s2588_s13 = smov [#allocation13]  }
 0x534   : > { %p2484_p13 = scmp.ne.s32.totalorder %s3090_s7, %s2483_s8  ;;  %s2487_s18 = sshll.u32 %s2588_s13, 4  ;;  %s2488_s18 = int_to_ptr.vmem [resolvable:$false] %s2487_s18 }
 0x535   : > { %s2489_s22 = scalar_lea.vmem %s2488_s18, 256  ;;  %p2490_p10 = scmp.lt.s32.totalorder %s3090_s7, %s2488_s18 }
 0x536   : > { %v2007_v59 = vld [vmem:[%s3204_s27] ss:$0 sm:$0xff]  ;;  %p2485_p3 = pnand %p2484_p13, %p3203_p7  ;;  %p2491_p1 = scmp.lt.s32.totalorder %s2489_s22, %s2483_s8 }
 0x537   : > { %s3088_s15 = scalar_lea.hbm %s3205_s23, %s2010_s16 }
 0x538   : > { %p2486_p6 = pneg %p2485_p3  ;;  %p2492_p0 = por %p2491_p1, %p2490_p10 }
 0x53a   : > { %p2493_p12 = pnand %p2492_p0, %p2486_p6 }
 0x582   : > { %v1500_v1 = vpop.f32.mrb[10].mxu0 }
 0x583   : > { %v2132_v47 = vpop.f32.mrb[11].mxu0  ;;  %v1723_v49 = vsel %vm512_vm1, %v1500_v1, 0.0 }
 0x5eb   : > { %v1573_v48 = vpop.f32.mrb[12].mxu1 }
 0x5ec   : > { %v1724_v50 = vsel %vm512_vm1, %v1573_v48, 0.0  ;;  %v2137_v51 = vpop.f32.mrb[13].mxu1 }
 0x5ed   : > { %v1725_v52 = vadd.f32 %v1724_v50, %v1723_v49 }
 0x5f0   : > { %v1646_v53 = vpop.f32.mrb[12].mxu0 }
 0x5f1   : > { %v1726_v54 = vsel %vm512_vm1, %v1646_v53, 0.0  ;;  %v2142_v55 = vpop.f32.mrb[13].mxu0 }
 0x5f2   : > { %v1727_v56 = vadd.f32 %v1726_v54, %v1725_v52 }
 0x5f4   : > { %v1719_v57 = vpop.f32.mrb[14].mxu1 }
 0x5f5   : > { %v1728_v58 = vsel %vm512_vm1, %v1719_v57, 0.0  ;;  %v2147_v60 = vpop.f32.mrb[15].mxu1 }
 0x5f6   : > { %v1729_v61 = vadd.f32 %v1728_v58, %v1727_v56 }
 0x5f8   : > { %v1737_v62 = vadd.f32 %v2007_v59, %v1729_v61 }
 0x5fa   : > { %1738 = vst.msk [vmem:[%s488_s17] sm:$0xff] %vm512_vm1, %v1737_v62 }
 0x5fb   : > { %2496 = shalt.err (!%p2493_p12)
}
 0x5fc   : > { %s2497_s21 = scalar_lea.hbm %s3088_s15, 128  ;;  %s2501_s30 = scalar_lea.hbm %s3205_s23, 256 }
 0x5fd   : > { %p2498_p4 = scmp.ne.s32.totalorder %s3088_s15, %s2497_s21  ;;  %p2502_p8 = scmp.lt.u32.totalorder %s3088_s15, %s3205_s23 }
 0x5fe   : > { %p2503_p2 = scmp.lt.u32.totalorder %s2501_s30, %s2497_s21  ;;  %p2505_p13 = scmp.lt.u32.totalorder %s2497_s21, %s3088_s15 }
 0x5ff   : > { %p2499_p9 = pnand %p2498_p4, %p3203_p7 }
 0x600   : > { %p2504_p5 = por %p2503_p2, %p2502_p8 }
 0x601   : > { %p2500_p11 = pneg %p2499_p9 }
 0x602   : > { %p2506_p3 = por %p2505_p13, %p2504_p5 }
 0x604   : > { %p2507_p6 = pnand %p2506_p3, %p2500_p11 }
 0x606   : > { %2510 = shalt.err (!%p2507_p6)
}
 0x607   : > { %2182 = dma.vmem_to_hbm [thread:$0]  (%p3203_p7), %s3090_s7, 128, %s3088_s15, %s1740_s28  }
 0x608 PF: > { %s3206_s26 = sld [smem:[#allocation23_spill]]  ;;  %s3207_s4 = sld [smem:[#allocation24_spill]] }
 0x609   : > { %p3209_p1 = scmp.ge.s32.totalorder %s2569_s12, 2 }
 0x60e   : > { %s1786_s25 = sand.u32 1, %s3206_s26   ;;  %p3208_p10 = scmp.ne.s32.totalorder %s3207_s4, 0 }
 0x60f   : > { %s1787_s27 = scalar_lea.sflag [#allocation4], %s1786_s25 }
 0x610   : > { %p2207_p0 = pnand %p3209_p1, %p3208_p10 }
 0x612   : > { %2548 = dma.done.wait (!%p2207_p0), %s1787_s27, 128  }
 0x613   : > { %2550 = vsyncadd (!%p2207_p0), %s1787_s27, 4294967168  ;;  %s1796_s16 = scalar_lea.sflag [#allocation15], %s1786_s25 }
 0x614   : > { %2552 = dma.done.wait (!%p2207_p0), %s1796_s16, 512  }
 0x615   : > { %2554 = vsyncadd (!%p2207_p0), %s1796_s16, 4294966784  ;;  %s3210_s12 = sld [smem:[#allocation25_spill]]  ;;  %s3211_s29 = sld [smem:[#allocation26_spill]] }
 0x616   : > { %s3212_s30 = smov %s2561_s10  ;;  %s3213_s10 = smov %s2565_s11 }
 0x61b   : > { %p33_p7 = scmp.ge.s32.totalorder %s3210_s12, 4   ;;  %s3214_s11 = smov %s3211_s29 }
 0x61d   :  { %35 = sbr.rel (!%p33_p7) target bundleno = 19 (0x13), region = 163 }
 0x624   :  { %1801 = vsyncpa [#allocation3], 1 }
 0x625   :  { %1803 = vsyncpa [#allocation3 + $0x1], 1 }
 0x626   :  { %1804 = vsyncpa [#allocation6], 1 }
 0x627   :  { %1806 = vsyncpa [#allocation6 + $0x1], 1 }
 0x628   :  { %1807 = vsyncpa [#allocation9], 1 }
 0x629   :  { %1809 = vsyncpa [#allocation9 + $0x1], 1 }
 0x62a   :  { %1810 = vsyncpa [#allocation12], 1 }
 0x62b   :  { %1811 = vsyncpa [#allocation4], 1 }
 0x62c   :  { %1813 = vsyncpa [#allocation4 + $0x1], 1 }
 0x62d   :  { %1814 = vsyncpa [#allocation15], 1 }
 0x62e   :  { %1816 = vsyncpa [#allocation15 + $0x1], 1 }

</bundles_post_ra>
